<compile_context>
chip_gen: v6e
topology: v6e:2x2x1
jax: 0.10.0
libtpu: 0.0.40
codegen_flags: <defaults>
</compile_context>

<pallas_src>
import functools

import numpy as np
import jax
import jax.numpy as jnp
from jax import lax
from jax.experimental import pallas as pl
from jax.experimental.pallas import tpu as pltpu

_LANE = 128
# Sublanes per inner compute chunk.  A multiple of 32 keeps dynamic sublane slices
# aligned to the native memory tiles of every dtype used here:
# int8 (32,128), bf16 (16,128), f32 (8,128).
_CHUNK = 32


def _round_up(x, m):
    return ((x + m - 1) // m) * m


def gen_pattern(num_row=206, num_col=80, radius=30):
    """Faithful port of CrossEntropyMask.gen_pattern (numpy, host side)."""
    M_c = int(num_row / 2)
    N_c = int(num_col / 2)
    p_pattern = np.ones((num_row, num_col)).flatten()
    indices = np.array(np.meshgrid(range(num_row), range(num_col))).T.reshape(-1, 2)
    distances = np.sqrt((indices[:, 0] - M_c) ** 2 * 0.5 + (indices[:, 1] - N_c) ** 2)
    distances_orders = distances // radius
    p_pattern[distances_orders == 0] = 0
    p_pattern = p_pattern.reshape(num_row, num_col)
    return p_pattern


def _ce_mask_kernel(pmask_ref, mask_ref, out_ref, acc_ref, *, necho, n_chunks):
    # pmask_ref: (E, ts, 128) VMEM tile of probabilities (f32 or bf16).
    # mask_ref:  (ts, 128) int8 VMEM tile of the {0,1} non-calib mask.
    # out_ref:   (1, 1) f32 SMEM per-core partial (written only at the last step).
    # acc_ref:   (_CHUNK, 128) f32 VMEM scratch, resident across the grid.
    t = pl.program_id(1)

    @pl.when(t == 0)
    def _init():
        acc_ref[...] = jnp.zeros_like(acc_ref)

    def chunk_body(ci, acc):
        off = pl.multiple_of(ci * _CHUNK, _CHUNK)
        mw = mask_ref[pl.ds(off, _CHUNK), :].astype(jnp.float32)   # {0,1}
        zero = jnp.zeros((_CHUNK, _LANE), jnp.float32)

        def echo_body(e, carry):
            s_p, s_l, s_pl = carry
            p = pmask_ref[e, pl.ds(off, _CHUNK), :].astype(jnp.float32)
            a = jnp.clip(p, 1e-12, 1.0 - 1e-12)      # torch.clamp(min=..., max=...)
            la = jnp.log(a + 1e-9)                    # log(a + 1e-09)  (EUP)
            return (s_p + p, s_l + la, s_pl + p * la)

        s_p, s_l, s_pl = lax.fori_loop(0, necho, echo_body, (zero, zero, zero),
                                       unroll=min(necho, 8))
        # sum_{i != j} p_j * log(clamp(p_i)+1e-9) == s_p*s_l - s_pl  (per position)
        return acc + (s_p * s_l - s_pl) * mw

    acc = lax.fori_loop(0, n_chunks, chunk_body,
                        jnp.zeros((_CHUNK, _LANE), jnp.float32))
    acc_ref[...] += acc

    @pl.when(t == pl.num_programs(1) - 1)
    def _finalize():
        out_ref[0, 0] = -jnp.sum(acc_ref[...])       # loss accumulates negatively


def cross_entropy_mask(pmask, non_calib_mask, *, tile_sublanes=512, num_cores=2):
    """Forward of CrossEntropyMask.

    pmask:          (E, H, W) float array (f32 or bf16; bf16 halves HBM traffic,
                    accumulation stays f32 inside the kernel).
    non_calib_mask: (H, W) static {0,1} pattern (numpy-convertible).
    """
    pmask = jnp.asarray(pmask)
    if pmask.dtype not in (jnp.bfloat16, jnp.float16, jnp.float32):
        pmask = pmask.astype(jnp.float32)
    necho = pmask.shape[0]

    mask_np = np.asarray(non_calib_mask)
    n_pos = int(mask_np.size)
    n_sel = int((mask_np == 1).sum())
    # 1/N is a static scalar; applied to the final scalar, not a full f32 mask.
    inv_n = (1.0 / n_sel) if n_sel > 0 else float("nan")

    # Lane-dense layout: flatten positions, pad to whole (ts, 128) tiles.
    sub_needed = -(-n_pos // _LANE)                                    # cdiv
    ts = max(_CHUNK, min(_round_up(tile_sublanes, _CHUNK),
                         _round_up(sub_needed, _CHUNK)))
    n_tiles = -(-sub_needed // ts)
    num_cores = max(1, min(num_cores, n_tiles))
    n_tiles = _round_up(n_tiles, num_cores)
    tiles_per_core = n_tiles // num_cores
    padded_sub = n_tiles * ts
    pad = padded_sub * _LANE - n_pos

    pm3 = jnp.pad(pmask.reshape(necho, n_pos), ((0, 0), (0, pad))).reshape(
        necho, padded_sub, _LANE)

    mk_np = np.zeros((padded_sub * _LANE,), dtype=np.int8)
    mk_np[:n_pos] = (mask_np.reshape(-1) == 1)
    mk2 = jnp.asarray(mk_np.reshape(padded_sub, _LANE))

    out = pl.pallas_call(
        functools.partial(_ce_mask_kernel, necho=necho, n_chunks=ts // _CHUNK),
        out_shape=jax.ShapeDtypeStruct((num_cores, 1), jnp.float32),
        grid=(num_cores, tiles_per_core),
        in_specs=[
            pl.BlockSpec((necho, ts, _LANE),
                         lambda c, t: (0, c * tiles_per_core + t, 0)),
            pl.BlockSpec((ts, _LANE),
                         lambda c, t: (c * tiles_per_core + t, 0)),
        ],
        out_specs=pl.BlockSpec((1, 1), lambda c, t: (c, 0),
                               memory_space=pltpu.MemorySpace.SMEM),
        scratch_shapes=[pltpu.VMEM((_CHUNK, _LANE), jnp.float32)],
        compiler_params=pltpu.CompilerParams(
            dimension_semantics=("parallel", "arbitrary")),
    )(pm3, mk2)

    return jnp.sum(out) * inv_n


def _reference(pmask, mask):
    """Pure-numpy port of the PyTorch forward (explicit double loop)."""
    pmask = np.asarray(pmask, dtype=np.float64)
    sel = np.asarray(mask) == 1
    necho = pmask.shape[0]
    loss = 0.0
    for i in range(necho):
        for j in range(necho):
            if j == i:
                continue
            a = np.clip(pmask[i][sel], 1e-12, 1 - 1e-12)
            b = pmask[j][sel]
            loss -= np.sum(b * np.log(a + 1e-9)) / b.shape[0]
    return loss


if __name__ == "__main__":
    # Small shapes consistent with the module (echoes x rows x cols).
    necho, nrow, ncol, radius = 4, 16, 16, 4

    mask_np = gen_pattern(num_row=nrow, num_col=ncol, radius=radius)

    key = jax.random.PRNGKey(0)
    pmask_f32 = jax.random.uniform(key, (necho, nrow, ncol), dtype=jnp.float32,
                                   minval=0.01, maxval=0.99)

    # f32 input path (faithful to the module's fp32 forward).
    loss32 = jax.block_until_ready(cross_entropy_mask(pmask_f32, mask_np))
    ref32 = _reference(np.asarray(pmask_f32), mask_np)
    assert np.isfinite(float(loss32))
    assert abs(float(loss32) - ref32) <= 1e-3 * max(1.0, abs(ref32)), (float(loss32), ref32)

    # bf16 input path (halves pmask HBM traffic; kernel accumulation stays f32).
    pmask_bf16 = pmask_f32.astype(jnp.bfloat16)
    loss16 = jax.block_until_ready(cross_entropy_mask(pmask_bf16, mask_np))
    ref16 = _reference(np.asarray(pmask_bf16.astype(jnp.float32)), mask_np)
    assert np.isfinite(float(loss16))
    assert abs(float(loss16) - ref16) <= 1e-3 * max(1.0, abs(ref16)), (float(loss16), ref16)

    print("KERNEL_OK")
</pallas_src>

<mosaic_0001>
module attributes {stable_mosaic.version = 11 : i64} {
  func.func @_ce_mask_kernel(%arg0: i32, %arg1: i32, %arg2: memref<4x32x128xf32, #tpu.memory_space<vmem>>, %arg3: memref<32x128xi8, #tpu.memory_space<vmem>>, %arg4: memref<1x1xf32, #tpu.memory_space<smem>>, %arg5: memref<32x128xf32, #tpu.memory_space<vmem>>) attributes {dimension_semantics = [#tpu.dimension_semantics<parallel>, #tpu.dimension_semantics<arbitrary>], iteration_bounds = array<i64: 1, 1>, scalar_prefetch = 0 : i64, scratch_operands = 1 : i64, tpu.core_type = #tpu.core_type<tc>, window_params = [{transform_indices = @transform_0, window_bounds = array<i64: 4, 32, 128>}, {transform_indices = @transform_1, window_bounds = array<i64: 32, 128>}, {transform_indices = @transform_2, window_bounds = array<i64: 1, 1>}]} {
    %c0_i32 = arith.constant 0 : i32
    %0 = arith.cmpi eq, %arg1, %c0_i32 : i32
    %1 = arith.extui %0 : i1 to i32
    %c0_i32_0 = arith.constant 0 : i32
    %2 = arith.cmpi ne, %1, %c0_i32_0 : i32
    scf.if %2 {
      %cst_27 = arith.constant 0.000000e+00 : f32
      %80 = vector.broadcast %cst_27 : f32 to vector<32x128xf32>
      %c0_28 = arith.constant 0 : index
      %c0_29 = arith.constant 0 : index
      %81 = vector.load %arg5[%c0_28, %c0_29] : memref<32x128xf32, #tpu.memory_space<vmem>>, vector<32x128xf32>
      tpu.vector_store %arg5[%c0_28, %c0_29], %80 {strides = array<i32>} : memref<32x128xf32, #tpu.memory_space<vmem>>, vector<32x128xf32>,
    } else {
    }
    %cst = arith.constant 0.000000e+00 : f32
    %3 = vector.broadcast %cst : f32 to vector<32x128xf32>
    %c0_i32_1 = arith.constant 0 : i32
    %c32_i32 = arith.constant 32 : i32
    %4 = arith.muli %c0_i32_1, %c32_i32 : i32
    %5 = tpu.assume_multiple %4, 32 : i32
    %6 = arith.index_cast %5 : i32 to index
    %c0 = arith.constant 0 : index
    %7 = vector.load %arg3[%6, %c0] : memref<32x128xi8, #tpu.memory_space<vmem>>, vector<32x128xi8>
    %8 = arith.sitofp %7 : vector<32x128xi8> to vector<32x128xf32>
    %cst_2 = arith.constant 0.000000e+00 : f32
    %9 = vector.broadcast %cst_2 : f32 to vector<32x128xf32>
    %c0_i32_3 = arith.constant 0 : i32
    %10 = arith.index_cast %c0_i32_3 : i32 to index
    %11 = arith.index_cast %5 : i32 to index
    %c0_4 = arith.constant 0 : index
    %12 = vector.load %arg2[%10, %11, %c0_4] : memref<4x32x128xf32, #tpu.memory_space<vmem>>, vector<1x32x128xf32>
    %13 = vector.shape_cast %12 : vector<1x32x128xf32> to vector<32x128xf32>
    %cst_5 = arith.constant 9.99999996E-13 : f32
    %cst_6 = arith.constant 1.000000e+00 : f32
    %14 = vector.broadcast %cst_5 : f32 to vector<32x128xf32>
    %15 = arith.maximumf %14, %13 : vector<32x128xf32>
    %16 = vector.broadcast %cst_6 : f32 to vector<32x128xf32>
    %17 = arith.minimumf %16, %15 : vector<32x128xf32>
    %cst_7 = arith.constant 9.99999971E-10 : f32
    %18 = vector.broadcast %cst_7 : f32 to vector<32x128xf32>
    %19 = arith.addf %17, %18 : vector<32x128xf32>
    %20 = math.log %19 : vector<32x128xf32>
    %21 = arith.addf %9, %13 : vector<32x128xf32>
    %22 = arith.addf %9, %20 : vector<32x128xf32>
    %23 = arith.mulf %13, %20 : vector<32x128xf32>
    %24 = arith.addf %9, %23 : vector<32x128xf32>
    %c1_i32 = arith.constant 1 : i32
    %25 = arith.index_cast %c1_i32 : i32 to index
    %26 = arith.index_cast %5 : i32 to index
    %c0_8 = arith.constant 0 : index
    %27 = vector.load %arg2[%25, %26, %c0_8] : memref<4x32x128xf32, #tpu.memory_space<vmem>>, vector<1x32x128xf32>
    %28 = vector.shape_cast %27 : vector<1x32x128xf32> to vector<32x128xf32>
    %cst_9 = arith.constant 9.99999996E-13 : f32
    %cst_10 = arith.constant 1.000000e+00 : f32
    %29 = vector.broadcast %cst_9 : f32 to vector<32x128xf32>
    %30 = arith.maximumf %29, %28 : vector<32x128xf32>
    %31 = vector.broadcast %cst_10 : f32 to vector<32x128xf32>
    %32 = arith.minimumf %31, %30 : vector<32x128xf32>
    %cst_11 = arith.constant 9.99999971E-10 : f32
    %33 = vector.broadcast %cst_11 : f32 to vector<32x128xf32>
    %34 = arith.addf %32, %33 : vector<32x128xf32>
    %35 = math.log %34 : vector<32x128xf32>
    %36 = arith.addf %21, %28 : vector<32x128xf32>
    %37 = arith.addf %22, %35 : vector<32x128xf32>
    %38 = arith.mulf %28, %35 : vector<32x128xf32>
    %39 = arith.addf %24, %38 : vector<32x128xf32>
    %c2_i32 = arith.constant 2 : i32
    %40 = arith.index_cast %c2_i32 : i32 to index
    %41 = arith.index_cast %5 : i32 to index
    %c0_12 = arith.constant 0 : index
    %42 = vector.load %arg2[%40, %41, %c0_12] : memref<4x32x128xf32, #tpu.memory_space<vmem>>, vector<1x32x128xf32>
    %43 = vector.shape_cast %42 : vector<1x32x128xf32> to vector<32x128xf32>
    %cst_13 = arith.constant 9.99999996E-13 : f32
    %cst_14 = arith.constant 1.000000e+00 : f32
    %44 = vector.broadcast %cst_13 : f32 to vector<32x128xf32>
    %45 = arith.maximumf %44, %43 : vector<32x128xf32>
    %46 = vector.broadcast %cst_14 : f32 to vector<32x128xf32>
    %47 = arith.minimumf %46, %45 : vector<32x128xf32>
    %cst_15 = arith.constant 9.99999971E-10 : f32
    %48 = vector.broadcast %cst_15 : f32 to vector<32x128xf32>
    %49 = arith.addf %47, %48 : vector<32x128xf32>
    %50 = math.log %49 : vector<32x128xf32>
    %51 = arith.addf %36, %43 : vector<32x128xf32>
    %52 = arith.addf %37, %50 : vector<32x128xf32>
    %53 = arith.mulf %43, %50 : vector<32x128xf32>
    %54 = arith.addf %39, %53 : vector<32x128xf32>
    %c3_i32 = arith.constant 3 : i32
    %55 = arith.index_cast %c3_i32 : i32 to index
    %56 = arith.index_cast %5 : i32 to index
    %c0_16 = arith.constant 0 : index
    %57 = vector.load %arg2[%55, %56, %c0_16] : memref<4x32x128xf32, #tpu.memory_space<vmem>>, vector<1x32x128xf32>
    %58 = vector.shape_cast %57 : vector<1x32x128xf32> to vector<32x128xf32>
    %cst_17 = arith.constant 9.99999996E-13 : f32
    %cst_18 = arith.constant 1.000000e+00 : f32
    %59 = vector.broadcast %cst_17 : f32 to vector<32x128xf32>
    %60 = arith.maximumf %59, %58 : vector<32x128xf32>
    %61 = vector.broadcast %cst_18 : f32 to vector<32x128xf32>
    %62 = arith.minimumf %61, %60 : vector<32x128xf32>
    %cst_19 = arith.constant 9.99999971E-10 : f32
    %63 = vector.broadcast %cst_19 : f32 to vector<32x128xf32>
    %64 = arith.addf %62, %63 : vector<32x128xf32>
    %65 = math.log %64 : vector<32x128xf32>
    %66 = arith.addf %51, %58 : vector<32x128xf32>
    %67 = arith.addf %52, %65 : vector<32x128xf32>
    %68 = arith.mulf %58, %65 : vector<32x128xf32>
    %69 = arith.addf %54, %68 : vector<32x128xf32>
    %c4_i32 = arith.constant 4 : i32
    %70 = arith.mulf %66, %67 : vector<32x128xf32>
    %71 = arith.subf %70, %69 : vector<32x128xf32>
    %72 = arith.mulf %71, %8 : vector<32x128xf32>
    %73 = arith.addf %3, %72 : vector<32x128xf32>
    %c1_i32_20 = arith.constant 1 : i32
    %c0_21 = arith.constant 0 : index
    %c0_22 = arith.constant 0 : index
    %74 = vector.load %arg5[%c0_21, %c0_22] : memref<32x128xf32, #tpu.memory_space<vmem>>, vector<32x128xf32>
    %75 = arith.addf %74, %73 : vector<32x128xf32>
    %c0_23 = arith.constant 0 : index
    %c0_24 = arith.constant 0 : index
    %76 = vector.load %arg5[%c0_23, %c0_24] : memref<32x128xf32, #tpu.memory_space<vmem>>, vector<32x128xf32>
    tpu.vector_store %arg5[%c0_23, %c0_24], %75 {strides = array<i32>} : memref<32x128xf32, #tpu.memory_space<vmem>>, vector<32x128xf32>,
    %c0_i32_25 = arith.constant 0 : i32
    %77 = arith.cmpi eq, %arg1, %c0_i32_25 : i32
    %78 = arith.extui %77 : i1 to i32
    %c0_i32_26 = arith.constant 0 : i32
    %79 = arith.cmpi ne, %78, %c0_i32_26 : i32
    scf.if %79 {
      %c0_27 = arith.constant 0 : index
      %c0_28 = arith.constant 0 : index
      %80 = vector.load %arg5[%c0_27, %c0_28] : memref<32x128xf32, #tpu.memory_space<vmem>>, vector<32x128xf32>
      %81 = vector.shape_cast %80 : vector<32x128xf32> to vector<1x32x128xf32>
      %cst_29 = arith.constant dense<0.000000e+00> : vector<1xf32>
      %82 = vector.multi_reduction <add>, %81, %cst_29 [1, 2] : vector<1x32x128xf32> to vector<1xf32>
      %83 = vector.shape_cast %82 : vector<1xf32> to vector<1x1x1xf32>
      %84 = vector.extract %83[0, 0, 0] : f32 from vector<1x1x1xf32>
      %cst_30 = arith.constant 0.000000e+00 : f32
      %85 = arith.subf %cst_30, %84 : f32
      %c0_31 = arith.constant 0 : index
      %c0_32 = arith.constant 0 : index
      %86 = memref.load %arg4[%c0_31, %c0_32] : memref<1x1xf32, #tpu.memory_space<smem>>
      memref.store %85, %arg4[%c0_31, %c0_32] : memref<1x1xf32, #tpu.memory_space<smem>>
    } else {
    }
    return
  }
  func.func @transform_0(%arg0: i32, %arg1: i32) -> (i32, i32, i32) {
    %c1_i32 = arith.constant 1 : i32
    %0 = arith.muli %arg0, %c1_i32 : i32
    %1 = arith.addi %0, %arg1 : i32
    %c0_i32 = arith.constant 0 : i32
    %c0_i32_0 = arith.constant 0 : i32
    %c0_i32_1 = arith.constant 0 : i32
    return %c0_i32, %1, %c0_i32_0 : i32, i32, i32
  }
  func.func @transform_1(%arg0: i32, %arg1: i32) -> (i32, i32) {
    %c1_i32 = arith.constant 1 : i32
    %0 = arith.muli %arg0, %c1_i32 : i32
    %1 = arith.addi %0, %arg1 : i32
    %c0_i32 = arith.constant 0 : i32
    %c0_i32_0 = arith.constant 0 : i32
    return %1, %c0_i32 : i32, i32
  }
  func.func @transform_2(%arg0: i32, %arg1: i32) -> (i32, i32) {
    %c0_i32 = arith.constant 0 : i32
    %c0_i32_0 = arith.constant 0 : i32
    return %arg0, %c0_i32 : i32, i32
  }
}

</mosaic_0001>

<bundles_post_ra>
// kernel: tpu_custom_call.1
= control target key start
LH: loop header
LB: loop body
LE: loop exit
PB: predicated region body
PF: predicated region fallthrough
CT: control target
= control target key end

     0   :  { %7 = vsyncpa [#allocation4], 0  ;;  %s517_s0 = inlined_call_operand.hbm [shape: f32[4,32,128], index: 0, kind: input, shape index: {}]   ;;  %s518_s1 = inlined_call_operand.hbm [shape: s8[32,128], index: 1, kind: input, shape index: {}]   ;;  %s519_s2 = inlined_call_operand.hbm [shape: f32[1,1], index: 2, kind: output, shape index: {}]  }
   0x1   :  { %8 = vsyncpa [#allocation7], 0 }
   0x2   :  { %9 = vsyncpa [#allocation5], 0  ;;  %s392_s9 = smov [#allocation3]  }
   0x3   :  { %s19_s10 = sshll.u32 %s392_s9, 4  ;;  %s20_s10 = int_to_ptr.vmem [resolvable:$true] %s19_s10 }
   0x4   :  { %s346_s11 = scalar_lea.vmem %s20_s10, 2048  ;;  %p351_p1 = scmp.lt.s32.totalorder %s20_s10, %s20_s10 }
   0x5   :  { %p347_p0 = scmp.ne.s32.totalorder %s20_s10, %s346_s11  ;;  %p352_p2 = scmp.lt.s32.totalorder %s346_s11, %s346_s11 }
   0x7   :  { %p353_p3 = por %p352_p2, %p351_p1 }
   0x9   :  { %p354_p4 = pnand %p353_p3, %p347_p0 }
   0xb   :  { %357 = shalt.err (!%p354_p4)
}
   0xc   :  { %s393_s12 = smov 128   ;;  %s394_s13 = smov 8  }
   0xd   :  { %25 = dma.hbm_to_vmem [thread:$0]  %s517_s0, 2048, %s20_s10, [#allocation4], %s393_s12, %s393_s12, %s394_s13  }
   0xe   :  { %s395_s16 = smov [#allocation6]  }
   0xf   :  { %s35_s17 = sshll.u32 %s395_s16, 4  ;;  %s36_s17 = int_to_ptr.vmem [resolvable:$true] %s35_s17 }
  0x10   :  { %s366_s18 = scalar_lea.vmem %s36_s17, 128  ;;  %p371_p6 = scmp.lt.s32.totalorder %s36_s17, %s36_s17 }
  0x11   :  { %p367_p5 = scmp.ne.s32.totalorder %s36_s17, %s366_s18  ;;  %p372_p7 = scmp.lt.s32.totalorder %s366_s18, %s366_s18 }
  0x13   :  { %p373_p8 = por %p372_p7, %p371_p6 }
  0x15   :  { %p374_p9 = pnand %p373_p8, %p367_p5 }
  0x17   :  { %377 = shalt.err (!%p374_p9)
}
  0x18   :  { %38 = dma.hbm_to_vmem [thread:$0]  %s518_s1, 128, %s36_s17, [#allocation7]  }
  0x19   :  { %386 = dma.done.wait [#allocation4], 2048  }
  0x1a   :  { %387 = vsyncadd [#allocation4], 4294965248 }
  0x1b   :  { %388 = dma.done.wait [#allocation7], 128  }
  0x1c   :  { %389 = vsyncadd [#allocation7], 4294967168  ;;  %v418_v0 = vld [vmem:[#allocation3] sm:$0xff]  ;;  %v420_v1 = vld [vmem:[#allocation3 + $0x8] sm:$0xff]  ;;  %s396_s21 = smov [#allocation8]  }
  0x1d   :  { %v422_v2 = vld [vmem:[#allocation3 + $0x10] sm:$0xff]  ;;  %v424_v3 = vld [vmem:[#allocation3 + $0x18] sm:$0xff]  ;;  %v426_v4 = vld [vmem:[#allocation3 + $0x20] sm:$0xff]  ;;  %v69_v5 = vmax.f32 %v418_v0, 1e-12 }
  0x1e   :  { %v70_v6 = vmax.f32 %v420_v1, 1e-12  ;;  %v71_v7 = vmax.f32 %v422_v2, 1e-12  ;;  %v431_v8 = vld [vmem:[#allocation3 + $0x28] sm:$0xff]  ;;  %v433_v9 = vld [vmem:[#allocation3 + $0x30] sm:$0xff] }
  0x1f   :  { %v72_v10 = vmax.f32 %v424_v3, 1e-12  ;;  %v73_v11 = vmin.f32 %v69_v5, 1.0  ;;  %v436_v14 = vld [vmem:[#allocation3 + $0x38] sm:$0xff]  ;;  %v111_v15 = vmax.f32 %v426_v4, 1e-12 }
  0x20   :  { %v74_v12 = vmin.f32 %v70_v6, 1.0  ;;  %v75_v13 = vmin.f32 %v71_v7, 1.0  ;;  %v112_v16 = vmax.f32 %v431_v8, 1e-12  ;;  %v113_v17 = vmax.f32 %v433_v9, 1e-12 }
  0x21   :  { %v441_v18 = vld [vmem:[#allocation3 + $0x40] sm:$0xff]  ;;  %v76_v19 = vmin.f32 %v72_v10, 1.0  ;;  %v77_v20 = vadd.f32 1e-09, %v73_v11  ;;  %v443_v22 = vld [vmem:[#allocation3 + $0x48] sm:$0xff]  ;;  %v115_v25 = vmin.f32 %v111_v15, 1.0  ;;  %v132_v15 = vadd.f32 %v431_v8, %v420_v1 }
  0x22   :  { %v78_v21 = vadd.f32 1e-09, %v74_v12  ;;  %v79_v23 = vadd.f32 1e-09, %v75_v13  ;;  %v114_v24 = vmax.f32 %v436_v14, 1e-12  ;;  %v131_v13 = vadd.f32 %v426_v4, %v418_v0 }
  0x23   :  { %v116_v26 = vmin.f32 %v112_v16, 1.0  ;;  %v80_v27 = vadd.f32 1e-09, %v76_v19  ;;  %306 = vlog2.f32 %v77_v20  ;;  %v117_v28 = vmin.f32 %v113_v17, 1.0  ;;  %v446_v29 = vld [vmem:[#allocation3 + $0x50] sm:$0xff]  ;;  %v448_v30 = vld [vmem:[#allocation3 + $0x58] sm:$0xff] }
  0x24   :  { %308 = vlog2.f32 %v78_v21  ;;  %v118_v31 = vmin.f32 %v114_v24, 1.0  ;;  %v119_v32 = vadd.f32 1e-09, %v115_v25  ;;  %v153_v35 = vmax.f32 %v441_v18, 1e-12  ;;  %v454_v44 = vld [vmem:[#allocation3 + $0x60] sm:$0xff] }
  0x25   :  { %v120_v33 = vadd.f32 1e-09, %v116_v26  ;;  %310 = vlog2.f32 %v79_v23  ;;  %v121_v34 = vadd.f32 1e-09, %v117_v28  ;;  %v154_v36 = vmax.f32 %v443_v22, 1e-12 }
  0x26   :  { %312 = vlog2.f32 %v80_v27  ;;  %v122_v37 = vadd.f32 1e-09, %v118_v31  ;;  %v155_v38 = vmax.f32 %v446_v29, 1e-12  ;;  %v156_v39 = vmax.f32 %v448_v30, 1e-12 }
  0x27   :  { %314 = vlog2.f32 %v119_v32  ;;  %v157_v40 = vmin.f32 %v153_v35, 1.0  ;;  %v158_v41 = vmin.f32 %v154_v36, 1.0  ;;  %v456_v45 = vld [vmem:[#allocation3 + $0x68] sm:$0xff]  ;;  %v458_v46 = vld [vmem:[#allocation3 + $0x70] sm:$0xff]  ;;  %v460_v49 = vld [vmem:[#allocation3 + $0x78] sm:$0xff]  ;;  %v133_v20 = vadd.f32 %v433_v9, %v422_v2 }
  0x28   :  { %316 = vlog2.f32 %v120_v33  ;;  %v159_v42 = vmin.f32 %v155_v38, 1.0  ;;  %v160_v43 = vmin.f32 %v156_v39, 1.0  ;;  %v195_v52 = vmax.f32 %v454_v44, 1e-12  ;;  %v466_v59 = vld [vmem:[#allocation6] sm:$0xff] }
  0x29   :  { %318 = vlog2.f32 %v121_v34  ;;  %v161_v47 = vadd.f32 1e-09, %v157_v40  ;;  %v162_v48 = vadd.f32 1e-09, %v158_v41  ;;  %v196_v53 = vmax.f32 %v456_v45, 1e-12 }
  0x2a   :  { %320 = vlog2.f32 %v122_v37  ;;  %v163_v50 = vadd.f32 1e-09, %v159_v42  ;;  %v164_v51 = vadd.f32 1e-09, %v160_v43  ;;  %v197_v54 = vmax.f32 %v458_v46, 1e-12 }
  0x2b   :  { %322 = vlog2.f32 %v161_v47  ;;  %v198_v55 = vmax.f32 %v460_v49, 1e-12  ;;  %v199_v56 = vmin.f32 %v195_v52, 1.0  ;;  %v200_v57 = vmin.f32 %v196_v53, 1.0 }
  0x2c   :  { %324 = vlog2.f32 %v162_v48  ;;  %v201_v58 = vmin.f32 %v197_v54, 1.0  ;;  %v57_v10 = vunpack.c.0.s8 %v466_v59  ;;  %v58_v11 = vunpack.c.1.s8 %v466_v59 }
  0x2d   :  { %326 = vlog2.f32 %v163_v50  ;;  %v202_v60 = vmin.f32 %v198_v55, 1.0  ;;  %v203_v61 = vadd.f32 1e-09, %v199_v56  ;;  %v204_v62 = vadd.f32 1e-09, %v200_v57 }
  0x2e   :  { %328 = vlog2.f32 %v164_v51  ;;  %v205_v63 = vadd.f32 1e-09, %v201_v58  ;;  %v59_v17 = vunpack.c.2.s8 %v466_v59  ;;  %v60_v23 = vunpack.c.3.s8 %v466_v59 }
  0x2f   :  { %v206_v6 = vadd.f32 1e-09, %v202_v60  ;;  %330 = vlog2.f32 %v203_v61  ;;  %v134_v25 = vadd.f32 %v436_v14, %v424_v3  ;;  %v480_v27 = vcvt.s32.f32 %v57_v10 }
  0x30   :  { %v307_v5 = vpop.eup %306  ;;  %332 = vlog2.f32 %v204_v62  ;;  %v482_v28 = vcvt.s32.f32 %v58_v11  ;;  %v173_v36 = vadd.f32 %v441_v18, %v131_v13  ;;  %v174_v37 = vadd.f32 %v443_v22, %v132_v15 }
  0x31   :  { %v309_v7 = vpop.eup %308  ;;  %v82_v19 = vmul.f32 0.6931472, %v307_v5  ;;  %334 = vlog2.f32 %v205_v63  ;;  %v175_v42 = vadd.f32 %v446_v29, %v133_v20  ;;  %v176_v51 = vadd.f32 %v448_v30, %v134_v25 }
  0x32   :  { %v311_v12 = vpop.eup %310  ;;  %v84_v24 = vmul.f32 0.6931472, %v309_v7  ;;  %336 = vlog2.f32 %v206_v6 }
  0x33   :  { %v313_v16 = vpop.eup %312  ;;  %v86_v31 = vmul.f32 0.6931472, %v311_v12  ;;  %v97_v39 = vmul.f32 %v82_v19, %v418_v0 }
  0x34   :  { %v315_v21 = vpop.eup %314  ;;  %v88_v34 = vmul.f32 0.6931472, %v313_v16  ;;  %v98_v47 = vmul.f32 %v84_v24, %v420_v1  ;;  %v216_v16 = vadd.f32 %v456_v45, %v174_v37 }
  0x35   :  { %v317_v26 = vpop.eup %316  ;;  %v124_v32 = vmul.f32 0.6931472, %v315_v21  ;;  %v99_v53 = vmul.f32 %v86_v31, %v422_v2 }
  0x36   :  { %v319_v33 = vpop.eup %318  ;;  %v126_v35 = vmul.f32 0.6931472, %v317_v26 }
  0x37   :  { %v321_v38 = vpop.eup %320  ;;  %v128_v40 = vmul.f32 0.6931472, %v319_v33  ;;  %v139_v41 = vmul.f32 %v124_v32, %v426_v4  ;;  %v135_v54 = vadd.f32 %v124_v32, %v82_v19  ;;  %v100_v4 = vmul.f32 %v88_v34, %v424_v3 }
  0x38   :  { %v323_v43 = vpop.eup %322  ;;  %v130_v48 = vmul.f32 0.6931472, %v321_v38  ;;  %v140_v50 = vmul.f32 %v126_v35, %v431_v8  ;;  %v136_v57 = vadd.f32 %v126_v35, %v84_v24  ;;  %v215_v3 = vadd.f32 %v454_v44, %v173_v36 }
  0x39   :  { %v325_v52 = vpop.eup %324  ;;  %v141_v55 = vmul.f32 %v128_v40, %v433_v9  ;;  %v166_v0 = vmul.f32 0.6931472, %v323_v43  ;;  %v137_v61 = vadd.f32 %v128_v40, %v86_v31  ;;  %v143_v62 = vadd.f32 %v139_v41, %v97_v39 }
  0x3a   :  { %v327_v56 = vpop.eup %326  ;;  %v142_v58 = vmul.f32 %v130_v48, %v436_v14  ;;  %v168_v60 = vmul.f32 0.6931472, %v325_v52  ;;  %v138_v5 = vadd.f32 %v130_v48, %v88_v34  ;;  %v144_v6 = vadd.f32 %v140_v50, %v98_v47 }
  0x3b   :  { %v329_v1 = vpop.eup %328  ;;  %v170_v8 = vmul.f32 0.6931472, %v327_v56  ;;  %v181_v63 = vmul.f32 %v166_v0, %v441_v18  ;;  %v145_v9 = vadd.f32 %v141_v55, %v99_v53  ;;  %v177_v10 = vadd.f32 %v166_v0, %v135_v54 }
  0x3c   :  { %v172_v2 = vmul.f32 0.6931472, %v329_v1  ;;  %v182_v7 = vmul.f32 %v168_v60, %v443_v22  ;;  %v331_v12 = vpop.eup %330  ;;  %v146_v14 = vadd.f32 %v142_v58, %v100_v4  ;;  %v178_v13 = vadd.f32 %v168_v60, %v136_v57 }
  0x3d   :  { %v183_v11 = vmul.f32 %v170_v8, %v446_v29  ;;  %v333_v19 = vpop.eup %332  ;;  %v179_v18 = vadd.f32 %v170_v8, %v137_v61  ;;  %v185_v20 = vadd.f32 %v181_v63, %v143_v62  ;;  %v208_v21 = vmul.f32 0.6931472, %v331_v12 }
  0x3e   :  { %v184_v15 = vmul.f32 %v172_v2, %v448_v30  ;;  %v217_v24 = vadd.f32 %v458_v46, %v175_v42  ;;  %v335_v22 = vpop.eup %334  ;;  %v180_v25 = vadd.f32 %v172_v2, %v138_v5  ;;  %v186_v26 = vadd.f32 %v182_v7, %v144_v6 }
  0x3f   :  { %v210_v31 = vmul.f32 0.6931472, %v333_v19  ;;  %v218_v29 = vadd.f32 %v460_v49, %v176_v51  ;;  %v337_v32 = vpop.eup %336  ;;  %v187_v33 = vadd.f32 %v183_v11, %v145_v9  ;;  %v212_v34 = vmul.f32 0.6931472, %v335_v22 }
  0x40   :  { %v219_v35 = vadd.f32 %v208_v21, %v177_v10  ;;  %v223_v30 = vmul.f32 %v208_v21, %v454_v44  ;;  %v188_v36 = vadd.f32 %v184_v15, %v146_v14  ;;  %v214_v37 = vmul.f32 0.6931472, %v337_v32 }
  0x41   :  { %v220_v38 = vadd.f32 %v210_v31, %v178_v13  ;;  %v224_v39 = vmul.f32 %v210_v31, %v456_v45  ;;  %v221_v40 = vadd.f32 %v212_v34, %v179_v18  ;;  %v225_v41 = vmul.f32 %v212_v34, %v458_v46 }
  0x42   :  { %v227_v42 = vadd.f32 %v223_v30, %v185_v20  ;;  %v231_v43 = vmul.f32 %v219_v35, %v215_v3  ;;  %v222_v47 = vadd.f32 %v214_v37, %v180_v25  ;;  %v226_v48 = vmul.f32 %v214_v37, %v460_v49 }
  0x43   :  { %v228_v50 = vadd.f32 %v224_v39, %v186_v26  ;;  %v232_v51 = vmul.f32 %v220_v38, %v216_v16  ;;  %v63_v52 = vcvt.s32.f32 %v59_v17  ;;  %v229_v53 = vadd.f32 %v225_v41, %v187_v33 }
  0x44   :  { %v233_v44 = vmul.f32 %v221_v40, %v217_v24  ;;  %v235_v54 = vsub.f32 %v231_v43, %v227_v42  ;;  %v64_v55 = vcvt.s32.f32 %v60_v23  ;;  %v230_v45 = vadd.f32 %v226_v48, %v188_v36 }
  0x45   :  { %v234_v0 = vmul.f32 %v222_v47, %v218_v29  ;;  %v236_v56 = vsub.f32 %v232_v51, %v228_v50 }
  0x46   :  { %v237_v46 = vsub.f32 %v233_v44, %v229_v53  ;;  %v239_v4 = vmul.f32 %v235_v54, %v480_v27 }
  0x47   :  { %v238_v57 = vsub.f32 %v234_v0, %v230_v45  ;;  %v240_v49 = vmul.f32 %v236_v56, %v482_v28 }
  0x48   :  { %v241_v58 = vmul.f32 %v237_v46, %v63_v52 }
  0x49   :  { %v242_v60 = vmul.f32 %v238_v57, %v64_v55  ;;  %v266_v1 = vadd.f32 %v240_v49, %v239_v4 }
  0x4b   :  { %v267_v61 = vadd.f32 %v266_v1, %v241_v58 }
  0x4d   :  { %v268_v17 = vadd.f32 %v267_v61, %v242_v60 }
  0x4f   :  { %269 = vadd.xlane.f32.xlu0 %v268_v17 }
  0xd8   :  { %v270_v62 = vpop.xlane.xlu0 %269 }
  0xd9   :  { %v271_v8 = vrot.slane %v270_v62, 4 }
  0xdb   :  { %v272_v63 = vadd.f32 %v271_v8, %v270_v62 }
  0xdd   :  { %v273_v59 = vrot.slane %v272_v63, 2 }
  0xdf   :  { %v274_v23 = vadd.f32 %v273_v59, %v272_v63 }
  0xe1   :  { %v275_v5 = vrot.slane %v274_v23, 1 }
  0xe3   :  { %v276_v6 = vadd.f32 %v275_v5, %v274_v23 }
  0xe5   :  { %299 = vpush %v276_v6 }
 0x116   :  { %s300_s0 = spop %299 }
 0x117   :  { %s278_s1 = ssub.f32 0.0, %s300_s0 }
 0x119   :  { %280 = sst [smem:[#allocation8]] %s278_s1 }
 0x11a   :  { %288 = dma.smem_to_hbm %s396_s21, 16, %s519_s2, [#allocation5]  }
 0x11b   :  { %390 = dma.done.wait [#allocation5], 16  }
 0x11c   :  { %391 = vsyncadd [#allocation5], 4294967280 }
 0x11d   :  { %292 = sfence }
 0x11e   :  { %293 = vsyncpa [#allocation4], 1 }
 0x11f   :  { %294 = vsyncpa [#allocation7], 1 }
 0x120   :  { %295 = vsyncpa [#allocation5], 1 }

</bundles_post_ra>
